<compile_context>
chip_gen: v7x
topology: tpu7x:2x2x1
jax: 0.10.0
libtpu: 0.0.40
codegen_flags: <defaults>
</compile_context>

<pallas_src>
import functools
import numpy as np
import jax
import jax.numpy as jnp
from jax.experimental import pallas as pl
from jax.experimental.pallas import tpu as pltpu

NUM_FILTERS = 64
FILTER_SIZES = (2, 3, 4)
KMAX = max(FILTER_SIZES)          # 4 taps in the fused window
LANE = 128


def _round_up(x, m):
    return (x + m - 1) // m * m


def _vmem_budget_bytes():
    """~75% of this chip's per-core VMEM (headroom for double buffers and
    compiler scratch).  Falls back to a v7x-conservative 64 MiB assumption."""
    try:
        cap = int(pltpu.get_tpu_info().vmem_capacity_bytes)
    except Exception:
        cap = 64 * 1024 * 1024
    return (cap * 3) // 4


def _pick_batch_tile(B, P, E, F, Tpad, budget_bytes):
    """Largest batch tile that fits the VMEM budget (rows are tiny, so the
    point is amortizing the ~0.35us per-grid-step overhead with big DMAs)."""
    emb_lanes = _round_up(KMAX * E, LANE)
    act_lanes = _round_up(3 * F, LANE)
    per_row = (P * emb_lanes * 2 * 2      # bf16 im2col tile, double-buffered
               + P * act_lanes * 4 * 2    # f32 conv + act intermediates
               + Tpad * 4 * 2)            # f32 logits tile, double-buffered
    tb = max(8, (budget_bytes // per_row) // 8 * 8)
    tb = min(tb, 2048)                    # ~1024 lands on v7x (48 MiB budget), ~2048 on v5e/v6e
    # Keep the grid >= 2 when the batch allows, so both TCs of a v7x megacore
    # get work (harmless extra step on 1-TC v5e/v6e).
    half = max(8, _round_up(-(-B // 2), 8))
    return min(tb, half)


def textcnn_kernel(x_ref, wp_ref, bp_ref, fcw_ref, fcb_ref, out_ref, *, L, P, F):
    """One batch tile: fused conv(2,3,4) + ReLU + per-branch max-over-time + FC.

    x_ref   : (TB*P, KMAX*E) bf16  wrapper-built im2col (no in-kernel relayout)
    wp_ref  : (KMAX*E, 3F)   bf16  packed conv weights (taps >= k zeroed)
    bp_ref  : (1, 3F)        f32
    fcw_ref : (3F, Tpad)     bf16
    fcb_ref : (1, Tpad)      f32
    out_ref : (TB, Tpad)     f32
    """
    TB = out_ref.shape[0]

    # Single MXU matmul for every tap of every filter size, f32 accumulation.
    conv = jax.lax.dot_general(
        x_ref[...], wp_ref[...],
        dimension_numbers=(((1,), (0,)), ((), ())),
        preferred_element_type=jnp.float32)                      # (TB*P, 3F)
    act = jnp.maximum(conv + bp_ref[...], 0.0)                   # bias + ReLU, f32
    act = act.reshape(TB, P, 3 * F)                              # leading-dim split only

    # Per-branch max over the statically valid time range (exact: L >= KMAX so
    # every branch has >= 1 valid position), then per-branch FC contribution.
    acc = jnp.zeros(out_ref.shape, jnp.float32)
    for bi, k in enumerate(FILTER_SIZES):
        feat = jnp.max(act[:, :L - k + 1, bi * F:(bi + 1) * F], axis=1)   # (TB, F)
        acc = acc + jnp.dot(feat.astype(jnp.bfloat16),
                            fcw_ref[bi * F:(bi + 1) * F, :],
                            preferred_element_type=jnp.float32)
    out_ref[...] = acc + fcb_ref[...]


def textcnn_forward(x_tokens, params, *, batch_tile=None):
    emb_table, w2, b2, w3, b3, w4, b4, fcw, fcb = params
    F = NUM_FILTERS
    V, E = emb_table.shape
    B, L = x_tokens.shape
    T = fcw.shape[1]
    assert L >= KMAX, "sequence must be at least the largest filter size"

    P = _round_up(L - 1, 8)          # padded number of conv positions (sublane aligned)
    Lp = P + KMAX - 1                # padded token length so taps 0..KMAX-1 stay in bounds
    Tpad = _round_up(T, LANE)        # lane-dense FC output width

    # ---- pack weights (would be cached once in real use) ----
    def pad_taps(w, k):              # (k, E, F) -> (KMAX, E, F), extra taps = 0
        return jnp.pad(w, ((0, KMAX - k), (0, 0), (0, 0)))

    wp = jnp.concatenate(
        [pad_taps(w2, 2), pad_taps(w3, 3), pad_taps(w4, 4)], axis=2
    ).reshape(KMAX * E, 3 * F).astype(jnp.bfloat16)                       # (4E, 3F)
    bp = jnp.concatenate([b2, b3, b4], axis=1).astype(jnp.float32)        # (1, 3F)
    fcw_p = jnp.zeros((3 * F, Tpad), jnp.bfloat16).at[:, :T].set(fcw.astype(jnp.bfloat16))
    fcb_p = jnp.zeros((1, Tpad), jnp.float32).at[:, :T].set(fcb.astype(jnp.float32))

    # ---- embedding gather fused with padding AND im2col (single XLA gather) ----
    # Row V of the extended table is the zero pad row; padded token positions
    # index it directly, so there is no extra pad pass over the activation slab.
    # E=16 rows are only 32 B, so the gather stays in XLA.
    # TODO(synk): revisit an in-kernel gather (PrefetchScalarGridSpec + row DMA)
    # only if E grows to >= 128 (>= 256 B rows).
    emb_ext = jnp.concatenate(
        [emb_table, jnp.zeros((1, E), emb_table.dtype)], axis=0
    ).astype(jnp.bfloat16)                                                # (V+1, E)
    tok_pad = jnp.pad(x_tokens, ((0, 0), (0, Lp - L)), constant_values=V)
    win = (jnp.arange(P, dtype=jnp.int32)[:, None]
           + jnp.arange(KMAX, dtype=jnp.int32)[None, :])                  # (P, KMAX)
    tok_win = tok_pad[:, win]                                             # (B, P, KMAX)
    x_im2col = emb_ext[tok_win].reshape(B, P, KMAX * E)                   # bf16 im2col

    # ---- batch tiling (VMEM-derived) ----
    budget = _vmem_budget_bytes()
    TB = batch_tile if batch_tile is not None else _pick_batch_tile(B, P, E, F, Tpad, budget)
    TB = max(8, _round_up(TB, 8))
    Bp = _round_up(B, TB)
    if Bp != B:
        x_im2col = jnp.pad(x_im2col, ((0, Bp - B), (0, 0), (0, 0)))
    x_flat = x_im2col.reshape(Bp * P, KMAX * E)                           # layout-clean 2D slab

    kernel = functools.partial(textcnn_kernel, L=L, P=P, F=F)
    out = pl.pallas_call(
        kernel,
        out_shape=jax.ShapeDtypeStruct((Bp, Tpad), jnp.float32),
        grid=(Bp // TB,),
        in_specs=[
            pl.BlockSpec((TB * P, KMAX * E), lambda i: (i, 0)),   # batch-tiled im2col
            pl.BlockSpec((KMAX * E, 3 * F), lambda i: (0, 0)),    # resident packed conv W
            pl.BlockSpec((1, 3 * F), lambda i: (0, 0)),           # resident conv bias
            pl.BlockSpec((3 * F, Tpad), lambda i: (0, 0)),        # resident FC weight
            pl.BlockSpec((1, Tpad), lambda i: (0, 0)),            # resident FC bias
        ],
        out_specs=pl.BlockSpec((TB, Tpad), lambda i: (i, 0)),     # lane-dense f32 output
        compiler_params=pltpu.CompilerParams(
            dimension_semantics=("parallel",),                    # megacore split on v7x
            vmem_limit_bytes=int(budget)),
    )(x_flat, wp, bp, fcw_p, fcb_p)

    return out[:B, :T]


def textcnn_reference(x_tokens, params):
    """PyTorch TextCNN.forward (eval mode) mirrored in JAX, evaluated with the
    same bf16 weights/activations and f32 accumulation as the kernel."""
    emb_table, w2, b2, w3, b3, w4, b4, fcw, fcb = params
    emb = emb_table[x_tokens].astype(jnp.bfloat16)                        # (B, L, E)
    B, L, E = emb.shape

    def branch(w, b, k):
        w = w.astype(jnp.bfloat16)
        Lout = L - k + 1
        acc = jnp.zeros((B, Lout, w.shape[-1]), jnp.float32)
        for j in range(k):
            acc = acc + jax.lax.dot_general(
                emb[:, j:j + Lout, :], w[j],
                dimension_numbers=(((2,), (0,)), ((), ())),
                preferred_element_type=jnp.float32)
        x = jnp.maximum(acc + b[0][None, None, :], 0.0)
        return jnp.max(x, axis=1)

    feat = jnp.concatenate([branch(w2, b2, 2), branch(w3, b3, 3),
                            branch(w4, b4, 4)], axis=1)                   # (B, 3F)
    out = jnp.dot(feat.astype(jnp.bfloat16), fcw.astype(jnp.bfloat16),
                  preferred_element_type=jnp.float32)
    return out + fcb[0][None, :]


def make_params(key, vocab_size, embed_size, tar_size):
    F = NUM_FILTERS
    ks = jax.random.split(key, 10)
    emb_table = jax.random.normal(ks[0], (vocab_size, embed_size), jnp.float32)

    def conv_w(k_, size):
        # PyTorch Conv2d weight is (F, 1, k, E); stored here as (k, E, F).
        return 0.1 * jax.random.normal(k_, (size, embed_size, F), jnp.float32)

    w2 = conv_w(ks[1], 2); b2 = 0.01 * jax.random.normal(ks[2], (1, F), jnp.float32)
    w3 = conv_w(ks[3], 3); b3 = 0.01 * jax.random.normal(ks[4], (1, F), jnp.float32)
    w4 = conv_w(ks[5], 4); b4 = 0.01 * jax.random.normal(ks[6], (1, F), jnp.float32)

    fc_in = F * len(FILTER_SIZES)
    fcw = 0.1 * jax.random.normal(ks[7], (fc_in, tar_size), jnp.float32)
    fcb = 0.01 * jax.random.normal(ks[8], (1, tar_size), jnp.float32)
    return (emb_table, w2, b2, w3, b3, w4, b4, fcw, fcb)


if __name__ == "__main__":
    # Small deterministic config: vocab 4096 -> embed_size = 2*floor(4096**0.25) = 16
    vocab_size = 4096
    embed_size = 16
    tar_size = 8
    batch = 2
    seq_len = 16

    key = jax.random.PRNGKey(0)
    k_tok, k_par = jax.random.split(key)
    x_tokens = jax.random.randint(k_tok, (batch, seq_len), 0, vocab_size, jnp.int32)
    params = make_params(k_par, vocab_size, embed_size, tar_size)

    out = textcnn_forward(x_tokens, params)
    out = jax.block_until_ready(out)

    ref = textcnn_reference(x_tokens, params)
    assert out.shape == (batch, tar_size)
    assert jnp.allclose(out, ref, atol=1e-2, rtol=1e-2), "mismatch vs JAX reference"

    print("KERNEL_OK")
</pallas_src>

<mosaic_0001>
module attributes {stable_mosaic.version = 11 : i64} {
  func.func @textcnn_kernel(%arg0: i32, %arg1: memref<128x64xbf16, #tpu.memory_space<vmem>>, %arg2: memref<64x192xbf16, #tpu.memory_space<vmem>>, %arg3: memref<1x192xf32, #tpu.memory_space<vmem>>, %arg4: memref<192x128xbf16, #tpu.memory_space<vmem>>, %arg5: memref<1x128xf32, #tpu.memory_space<vmem>>, %arg6: memref<8x128xf32, #tpu.memory_space<vmem>>) attributes {dimension_semantics = [#tpu.dimension_semantics<parallel>], iteration_bounds = array<i64: 1>, scalar_prefetch = 0 : i64, scratch_operands = 0 : i64, tpu.core_type = #tpu.core_type<tc>, window_params = [{transform_indices = @transform_0, window_bounds = array<i64: 128, 64>}, {pipeline_mode = #tpu.pipeline_mode<synchronous>, transform_indices = @transform_1, window_bounds = array<i64: 64, 192>}, {pipeline_mode = #tpu.pipeline_mode<synchronous>, transform_indices = @transform_2, window_bounds = array<i64: 1, 192>}, {pipeline_mode = #tpu.pipeline_mode<synchronous>, transform_indices = @transform_3, window_bounds = array<i64: 192, 128>}, {pipeline_mode = #tpu.pipeline_mode<synchronous>, transform_indices = @transform_4, window_bounds = array<i64: 1, 128>}, {transform_indices = @transform_5, window_bounds = array<i64: 8, 128>}]} {
    %c0 = arith.constant 0 : index
    %c0_0 = arith.constant 0 : index
    %0 = vector.load %arg1[%c0, %c0_0] : memref<128x64xbf16, #tpu.memory_space<vmem>>, vector<128x64xbf16>
    %c0_1 = arith.constant 0 : index
    %c0_2 = arith.constant 0 : index
    %1 = vector.load %arg2[%c0_1, %c0_2] : memref<64x192xbf16, #tpu.memory_space<vmem>>, vector<64x192xbf16>
    %cst = arith.constant dense<0.000000e+00> : vector<128x192xf32>
    %2 = tpu.matmul %0, %1, %cst {dimension_numbers = #tpu.dot_dimension_numbers<[1], [0], [0], [1], [0, 0, 1, 1], [], []>} : vector<128x64xbf16>, vector<64x192xbf16>, vector<128x192xf32> -> vector<128x192xf32>
    %c0_3 = arith.constant 0 : index
    %c0_4 = arith.constant 0 : index
    %3 = vector.load %arg3[%c0_3, %c0_4] : memref<1x192xf32, #tpu.memory_space<vmem>>, vector<1x192xf32>
    %4 = vector.broadcast %3 : vector<1x192xf32> to vector<128x192xf32>
    %5 = arith.addf %2, %4 : vector<128x192xf32>
    %cst_5 = arith.constant 0.000000e+00 : f32
    %6 = vector.broadcast %cst_5 : f32 to vector<128x192xf32>
    %7 = arith.maximumf %5, %6 : vector<128x192xf32>
    %8 = vector.shape_cast %7 : vector<128x192xf32> to vector<8x16x192xf32>
    %cst_6 = arith.constant 0.000000e+00 : f32
    %9 = vector.broadcast %cst_6 : f32 to vector<8x128xf32>
    %10 = vector.extract_strided_slice %8 {offsets = [0, 0, 0], sizes = [8, 15, 64], strides = [1, 1, 1]} : vector<8x16x192xf32> to vector<8x15x64xf32>
    %cst_7 = arith.constant dense<0xFF800000> : vector<8x64xf32>
    %11 = vector.multi_reduction <maximumf>, %10, %cst_7 [1] : vector<8x15x64xf32> to vector<8x64xf32>
    %12 = arith.truncf %11 : vector<8x64xf32> to vector<8x64xbf16>
    %c0_8 = arith.constant 0 : index
    %c0_9 = arith.constant 0 : index
    %13 = vector.load %arg4[%c0_8, %c0_9] : memref<192x128xbf16, #tpu.memory_space<vmem>>, vector<64x128xbf16>
    %cst_10 = arith.constant dense<0.000000e+00> : vector<8x128xf32>
    %14 = tpu.matmul %12, %13, %cst_10 {dimension_numbers = #tpu.dot_dimension_numbers<[1], [0], [0], [1], [0, 0, 1, 1], [], []>} : vector<8x64xbf16>, vector<64x128xbf16>, vector<8x128xf32> -> vector<8x128xf32>
    %15 = arith.addf %9, %14 : vector<8x128xf32>
    %16 = vector.extract_strided_slice %8 {offsets = [0, 0, 64], sizes = [8, 14, 64], strides = [1, 1, 1]} : vector<8x16x192xf32> to vector<8x14x64xf32>
    %cst_11 = arith.constant dense<0xFF800000> : vector<8x64xf32>
    %17 = vector.multi_reduction <maximumf>, %16, %cst_11 [1] : vector<8x14x64xf32> to vector<8x64xf32>
    %18 = arith.truncf %17 : vector<8x64xf32> to vector<8x64xbf16>
    %c64 = arith.constant 64 : index
    %c0_12 = arith.constant 0 : index
    %19 = vector.load %arg4[%c64, %c0_12] : memref<192x128xbf16, #tpu.memory_space<vmem>>, vector<64x128xbf16>
    %cst_13 = arith.constant dense<0.000000e+00> : vector<8x128xf32>
    %20 = tpu.matmul %18, %19, %cst_13 {dimension_numbers = #tpu.dot_dimension_numbers<[1], [0], [0], [1], [0, 0, 1, 1], [], []>} : vector<8x64xbf16>, vector<64x128xbf16>, vector<8x128xf32> -> vector<8x128xf32>
    %21 = arith.addf %15, %20 : vector<8x128xf32>
    %22 = vector.extract_strided_slice %8 {offsets = [0, 0, 128], sizes = [8, 13, 64], strides = [1, 1, 1]} : vector<8x16x192xf32> to vector<8x13x64xf32>
    %cst_14 = arith.constant dense<0xFF800000> : vector<8x64xf32>
    %23 = vector.multi_reduction <maximumf>, %22, %cst_14 [1] : vector<8x13x64xf32> to vector<8x64xf32>
    %24 = arith.truncf %23 : vector<8x64xf32> to vector<8x64xbf16>
    %c128 = arith.constant 128 : index
    %c0_15 = arith.constant 0 : index
    %25 = vector.load %arg4[%c128, %c0_15] : memref<192x128xbf16, #tpu.memory_space<vmem>>, vector<64x128xbf16>
    %cst_16 = arith.constant dense<0.000000e+00> : vector<8x128xf32>
    %26 = tpu.matmul %24, %25, %cst_16 {dimension_numbers = #tpu.dot_dimension_numbers<[1], [0], [0], [1], [0, 0, 1, 1], [], []>} : vector<8x64xbf16>, vector<64x128xbf16>, vector<8x128xf32> -> vector<8x128xf32>
    %27 = arith.addf %21, %26 : vector<8x128xf32>
    %c0_17 = arith.constant 0 : index
    %c0_18 = arith.constant 0 : index
    %28 = vector.load %arg5[%c0_17, %c0_18] : memref<1x128xf32, #tpu.memory_space<vmem>>, vector<1x128xf32>
    %29 = vector.broadcast %28 : vector<1x128xf32> to vector<8x128xf32>
    %30 = arith.addf %27, %29 : vector<8x128xf32>
    %c0_19 = arith.constant 0 : index
    %c0_20 = arith.constant 0 : index
    %31 = vector.load %arg6[%c0_19, %c0_20] : memref<8x128xf32, #tpu.memory_space<vmem>>, vector<8x128xf32>
    tpu.vector_store %arg6[%c0_19, %c0_20], %30 {strides = array<i32>} : memref<8x128xf32, #tpu.memory_space<vmem>>, vector<8x128xf32>,
    return
  }
  func.func @transform_0(%arg0: i32) -> (i32, i32) {
    %c0_i32 = arith.constant 0 : i32
    %c0_i32_0 = arith.constant 0 : i32
    return %arg0, %c0_i32 : i32, i32
  }
  func.func @transform_1(%arg0: i32) -> (i32, i32) {
    %c0_i32 = arith.constant 0 : i32
    %c0_i32_0 = arith.constant 0 : i32
    %c0_i32_1 = arith.constant 0 : i32
    return %c0_i32, %c0_i32_0 : i32, i32
  }
  func.func @transform_2(%arg0: i32) -> (i32, i32) {
    %c0_i32 = arith.constant 0 : i32
    %c0_i32_0 = arith.constant 0 : i32
    %c0_i32_1 = arith.constant 0 : i32
    return %c0_i32, %c0_i32_0 : i32, i32
  }
  func.func @transform_3(%arg0: i32) -> (i32, i32) {
    %c0_i32 = arith.constant 0 : i32
    %c0_i32_0 = arith.constant 0 : i32
    %c0_i32_1 = arith.constant 0 : i32
    return %c0_i32, %c0_i32_0 : i32, i32
  }
  func.func @transform_4(%arg0: i32) -> (i32, i32) {
    %c0_i32 = arith.constant 0 : i32
    %c0_i32_0 = arith.constant 0 : i32
    %c0_i32_1 = arith.constant 0 : i32
    return %c0_i32, %c0_i32_0 : i32, i32
  }
  func.func @transform_5(%arg0: i32) -> (i32, i32) {
    %c0_i32 = arith.constant 0 : i32
    %c0_i32_0 = arith.constant 0 : i32
    return %arg0, %c0_i32 : i32, i32
  }
}

</mosaic_0001>

<bundles_post_ra>
// kernel: tpu_custom_call.1
= control target key start
LH: loop header
LB: loop body
LE: loop exit
PB: predicated region body
PF: predicated region fallthrough
CT: control target
= control target key end

     0   :  { %10 = vsyncpa [#allocation3], 0  ;;  %s1383_s0 = inlined_call_operand.vmem [shape: bf16[128,64], index: 0, kind: input, shape index: {}]   ;;  %s1384_s1 = inlined_call_operand.hbm [shape: bf16[64,192], index: 1, kind: input, shape index: {}]   ;;  %s1385_s2 = inlined_call_operand.vmem [shape: f32[1,192], index: 2, kind: input, shape index: {}]   ;;  %s1386_s3 = inlined_call_operand.vmem [shape: bf16[192,128], index: 3, kind: input, shape index: {}]   ;;  %s1387_s4 = inlined_call_operand.vmem [shape: f32[1,128], index: 4, kind: input, shape index: {}]   ;;  %s1388_s5 = inlined_call_operand.hbm [shape: f32[8,128], index: 5, kind: output, shape index: {}]  }
   0x1   :  { %11 = vsyncpa [#allocation4], 0  ;;  %s1076_s18 = smov [#allocation2]   ;;  %s1028_s22 = scalar_lea.hbm %s1384_s1, 1024 }
   0x2   :  { %s19_s19 = sshll.u32 %s1076_s18, 4  ;;  %p1029_p0 = scmp.ne.s32.totalorder %s1384_s1, %s1028_s22  ;;  %s20_s19 = int_to_ptr.vmem [resolvable:$true] %s19_s19 }
   0x3   :  { %p1032_p1 = scmp.lt.u32.totalorder %s1028_s22, %s1384_s1 }
   0x5   :  { %p1034_p2 = pnand %p1032_p1, %p1029_p0 }
   0x7   :  { %1037 = shalt.err (!%p1034_p2)
}
   0x8   :  { %s1038_s27 = scalar_lea.vmem %s20_s19, 1024  ;;  %p1043_p4 = scmp.lt.s32.totalorder %s20_s19, %s20_s19 }
   0x9   :  { %p1039_p3 = scmp.ne.s32.totalorder %s20_s19, %s1038_s27  ;;  %p1044_p5 = scmp.lt.s32.totalorder %s1038_s27, %s1038_s27 }
   0xb   :  { %p1045_p6 = por %p1044_p5, %p1043_p4 }
   0xd   :  { %p1046_p7 = pnand %p1045_p6, %p1039_p3 }
   0xf   :  { %1049 = shalt.err (!%p1046_p7)
}
  0x10   :  { %s1077_s28 = smov 128   ;;  %s1078_s29 = smov 8  }
  0x11   :  { %25 = dma.hbm_to_vmem [thread:$0]  %s1384_s1, 1024, %s20_s19, [#allocation3], %s1077_s28, %s1077_s28, %s1078_s29  }
  0x12   :  { %1072 = dma.done.wait [#allocation3], 1024  }
  0x13   :  { %1073 = vsyncadd [#allocation3], 4294966272  ;;  %v1079_v0 = vmov 0   ;;  %v996_v1 = vld [vmem:[#allocation2 + $0x4] ss:$8 sps:$4 sm:$0xff]   ;;  %vm152_vm0 = vcmask 523264   ;;  %v62_v22 = vlaneseq }
  0x14   :  { %209 = vmatprep.mubr.bf16.mxu0 %v1079_v0  ;;  %v998_v2 = vld [vmem:[#allocation2] ss:$8 sps:$4 sm:$0xff]   ;;  %177 = vmatprep.subr.bf16.mxu0 %v996_v1  ;;  %v999_v3 = vld [vmem:[#allocation2 + $0x14] ss:$8 sps:$4 sm:$0xff]   ;;  %v1001_v4 = vld [vmem:[#allocation2 + $0x10] ss:$8 sps:$4 sm:$0xff]  }
  0x15   :  { %178 = vmatpush1.bf16.msra.mxu0 %v998_v2  ;;  %v1002_v5 = vld [vmem:[#allocation2 + $0x24] ss:$8 sps:$4 sm:$0xff]   ;;  %v1004_v6 = vld [vmem:[#allocation2 + $0x20] ss:$8 sps:$4 sm:$0xff]   ;;  %v1005_v7 = vld [vmem:[#allocation2 + $0x34] ss:$8 sps:$4 sm:$0xff]  }
  0x16   :  { %179 = vmatprep.subr.bf16.mxu0 %v999_v3  ;;  %v1007_v8 = vld [vmem:[#allocation2 + $0x30] ss:$8 sps:$4 sm:$0xff]   ;;  %v1008_v9 = vld [vmem:[%s1383_s0] sm:$0xff]   ;;  %v1009_v10 = vld [vmem:[%s1383_s0 + $0x8] sm:$0xff]   ;;  %v1080_v18 = vmov 0.0   ;;  %v63_v23 = vshrl.u32 %v62_v22, 7 }
  0x17   :  { %v1010_v11 = vld [vmem:[%s1383_s0 + $0x10] sm:$0xff]   ;;  %v1011_v12 = vld [vmem:[%s1383_s0 + $0x18] sm:$0xff]   ;;  %v1012_v13 = vld [vmem:[%s1383_s0 + $0x20] sm:$0xff]   ;;  %952 = vmatprep.subr.bf16.mxu1 %v1080_v18  ;;  %vm411_vm1 = vcmask 1048064   ;;  %vm323_vm2 = vcmask 522240   ;;  %vm413_vm3 = vcmask 1046016  }
  0x18   :  { %v1013_v14 = vld [vmem:[%s1383_s0 + $0x28] sm:$0xff]   ;;  %v1014_v15 = vld [vmem:[%s1383_s0 + $0x30] sm:$0xff]   ;;  %v1015_v16 = vld [vmem:[%s1383_s0 + $0x38] sm:$0xff]   ;;  %v64_v24 = vsub.s32 0, %v63_v23  ;;  %v68_v26 = vsub.s32 1, %v63_v23  ;;  %vm693_vm4 = vcmask 520192  }
  0x19   :  { %180 = vmatpush1.bf16.msra.mxu0 %v1001_v4  ;;  %v1016_v17 = vld [vmem:[%s1386_s3 + $0x20] sm:$0xff]   ;;  %v1017_v19 = vld [vmem:[%s1386_s3 + $0x28] sm:$0xff]   ;;  %v1018_v20 = vld [vmem:[%s1386_s3 + $0x30] sm:$0xff]   ;;  %vm517_vm5 = vcmask 1041409   ;;  %vm519_vm6 = vcmask 1042434   ;;  %vm521_vm7 = vcmask 1043459  }
  0x1a   :  { %181 = vmatprep.subr.bf16.mxu0 %v1002_v5  ;;  %953 = vmatpush3.bf16.msra.mxu1 %v1016_v17  ;;  %v1019_v21 = vld [vmem:[%s1386_s3 + $0x38] sm:$0xff]   ;;  %v60_v25 = vld [vmem:[%s1385_s2] sm:$0x3]  ;;  %vm523_vm8 = vcmask 1044484   ;;  %vm525_vm9 = vcmask 1045509   ;;  %vm527_vm10 = vcmask 1046534  }
  0x1b   :  { %954 = vmatprep.subr.bf16.mxu1 %v1080_v18  ;;  %v1178_v27 = vrot.slane %v60_v25, %v64_v24  ;;  %v1180_v28 = vrot.slane %v60_v25, %v68_v26  ;;  %vm1081_vm11 = vmmov 0   ;;  %vm529_vm12 = vcmask 1047559   ;;  %s1082_s2 = smov 64  }
  0x1c   :  { %960 = vmatprep.mubr.msk.bf16.mxu1 %vm1081_vm11, %v1080_v18 }
  0x1d   :  { %182 = vmatpush1.bf16.msra.mxu0 %v1004_v6 }
  0x1e   :  { %183 = vmatprep.subr.bf16.mxu0 %v1005_v7  ;;  %955 = vmatpush3.bf16.msra.mxu1 %v1017_v19 }
  0x1f   :  { %956 = vmatprep.subr.bf16.mxu1 %v1080_v18 }
  0x21   :  { %184 = vmatpush1.bf16.msra.mxu0 %v1007_v8 }
  0x22   :  { %957 = vmatpush3.bf16.msra.mxu1 %v1018_v20 }
  0x23   :  { %958 = vmatprep.subr.bf16.mxu1 %v1080_v18 }
  0x24   :  { %913 = vmatmul.mubr.msk.bf16.vlgmr.msra.gmra.mrb[0].mxu0 %vm152_vm0, %v1008_v9 }
  0x25   :  { %219 = vmatprep.mubr.bf16.mxu0 %v1079_v0 }
  0x26   :  { %959 = vmatpush3.bf16.msra.mxu1 %v1019_v21 }
  0x27   :  { %964 = vmatprep.subr.bf16.mxu1 %v1080_v18 }
  0x2c   :  { %914 = vmatmul.mubr.msk.bf16.gmra.mrb[4].mxu0 %vm152_vm0, %v1009_v10 }
  0x2d   :  { %229 = vmatprep.mubr.bf16.mxu0 %v1079_v0 }
  0x34   :  { %915 = vmatmul.mubr.msk.bf16.gmra.mrb[8].mxu0 %vm152_vm0, %v1010_v11 }
  0x35   :  { %239 = vmatprep.mubr.bf16.mxu0 %v1079_v0 }
  0x3c   :  { %916 = vmatmul.mubr.msk.bf16.gmra.mrb[12].mxu0 %vm152_vm0, %v1011_v12 }
  0x3d   :  { %249 = vmatprep.mubr.bf16.mxu0 %v1079_v0 }
  0x44   :  { %917 = vmatmul.mubr.msk.bf16.gmra.mrb[16].mxu0 %vm152_vm0, %v1012_v13 }
  0x45   :  { %259 = vmatprep.mubr.bf16.mxu0 %v1079_v0 }
  0x4c   :  { %918 = vmatmul.mubr.msk.bf16.gmra.mrb[20].mxu0 %vm152_vm0, %v1013_v14 }
  0x4d   :  { %269 = vmatprep.mubr.bf16.mxu0 %v1079_v0 }
  0x54   :  { %919 = vmatmul.mubr.msk.bf16.gmra.mrb[24].mxu0 %vm152_vm0, %v1014_v15 }
  0x55   :  { %279 = vmatprep.mubr.bf16.mxu0 %v1079_v0 }
  0x5c   :  { %920 = vmatmul.mubr.msk.bf16.gmra.mrb[28].mxu0 %vm152_vm0, %v1015_v16 }
  0xf7   :  { %v211_v29 = vpop.f32.mrb[0].mxu0 }
  0xf8   :  { %v212_v30 = vadd.f32 %v211_v29, %v1178_v27  ;;  %v213_v31 = vpop.f32.mrb[1].mxu0 }
  0xf9   :  { %v214_v32 = vadd.f32 %v213_v31, %v1180_v28  ;;  %v215_v33 = vpop.f32.mrb[2].mxu0 }
  0xfa   :  { %v290_v34 = vmax.f32 %v212_v30, 0.0  ;;  %v216_v35 = vadd.f32 %v215_v33, %v1178_v27  ;;  %v217_v36 = vpop.f32.mrb[3].mxu0 }
  0xfb   :  { %v291_v37 = vmax.f32 %v214_v32, 0.0  ;;  %v218_v38 = vadd.f32 %v217_v36, %v1180_v28 }
  0xfc   :  { %v292_v39 = vmax.f32 %v216_v35, 0.0  ;;  %v322_v41 = vsel %vm152_vm0, %v290_v34, -inf  ;;  %v412_v42 = vsel %vm411_vm1, %v290_v34, -inf }
  0xfd   :  { %v293_v40 = vmax.f32 %v218_v38, 0.0  ;;  %v692_v45 = vsel %vm152_vm0, %v291_v37, -inf }
  0xfe   :  { %v324_v43 = vsel %vm323_vm2, %v292_v39, -inf  ;;  %v414_v44 = vsel %vm413_vm3, %v292_v39, -inf }
  0xff   :  { %v325_v46 = vmax.f32 %v322_v41, %v324_v43  ;;  %v415_v47 = vmax.f32 %v412_v42, %v414_v44  ;;  %v694_v48 = vsel %vm693_vm4, %v293_v40, -inf  ;;  %v221_v49 = vpop.f32.mrb[4].mxu0 }
 0x100   :  { %v695_v50 = vmax.f32 %v692_v45, %v694_v48  ;;  %v222_v51 = vadd.f32 %v221_v49, %v1178_v27  ;;  %v223_v52 = vpop.f32.mrb[5].mxu0 }
 0x101   :  { %v326_v53 = vrot.slane %v325_v46, 4  ;;  %v416_v54 = vrot.slane %v415_v47, 4  ;;  %v224_v55 = vadd.f32 %v223_v52, %v1180_v28  ;;  %v225_v56 = vpop.f32.mrb[6].mxu0 }
 0x102   :  { %v696_v57 = vrot.slane %v695_v50, 4  ;;  %v294_v58 = vmax.f32 %v222_v51, 0.0  ;;  %v226_v59 = vadd.f32 %v225_v56, %v1178_v27  ;;  %v227_v60 = vpop.f32.mrb[7].mxu0 }
 0x103   :  { %v327_v61 = vmax.f32 %v325_v46, %v326_v53  ;;  %v417_v62 = vmax.f32 %v415_v47, %v416_v54  ;;  %v228_v63 = vadd.f32 %v227_v60, %v1180_v28  ;;  %v295_v1 = vmax.f32 %v224_v55, 0.0 }
 0x104   :  { %v697_v0 = vmax.f32 %v695_v50, %v696_v57  ;;  %v296_v2 = vmax.f32 %v226_v59, 0.0  ;;  %v332_v5 = vsel %vm152_vm0, %v294_v58, -inf  ;;  %v422_v8 = vsel %vm411_vm1, %v294_v58, -inf }
 0x105   :  { %v328_v3 = vrot.slane %v327_v61, 2  ;;  %v418_v4 = vrot.slane %v417_v62, 2  ;;  %v297_v6 = vmax.f32 %v228_v63, 0.0  ;;  %v702_v17 = vsel %vm152_vm0, %v295_v1, -inf }
 0x106   :  { %v698_v7 = vrot.slane %v697_v0, 2  ;;  %v333_v9 = vsel %vm323_vm2, %v296_v2, -inf  ;;  %v423_v10 = vsel %vm413_vm3, %v296_v2, -inf }
 0x107   :  { %v329_v11 = vmax.f32 %v327_v61, %v328_v3  ;;  %v419_v12 = vmax.f32 %v417_v62, %v418_v4  ;;  %v334_v13 = vmax.f32 %v332_v5, %v333_v9  ;;  %v424_v14 = vmax.f32 %v422_v8, %v423_v10  ;;  %v231_v15 = vpop.f32.mrb[8].mxu0 }
 0x108   :  { %v699_v16 = vmax.f32 %v697_v0, %v698_v7  ;;  %v703_v19 = vsel %vm693_vm4, %v297_v6, -inf  ;;  %v232_v20 = vadd.f32 %v231_v15, %v1178_v27  ;;  %v233_v21 = vpop.f32.mrb[9].mxu0 }
 0x109   :  { %v330_v22 = vrot.slane %v329_v11, 1  ;;  %v420_v23 = vrot.slane %v419_v12, 1  ;;  %v335_v24 = vrot.slane %v334_v13, 4  ;;  %v425_v25 = vrot.slane %v424_v14, 4  ;;  %v235_v26 = vpop.f32.mrb[10].mxu0 }
 0x10a   :  { %v700_v29 = vrot.slane %v699_v16, 1  ;;  %v704_v30 = vmax.f32 %v702_v17, %v703_v19  ;;  %v298_v31 = vmax.f32 %v232_v20, 0.0  ;;  %v234_v32 = vadd.f32 %v233_v21, %v1180_v28  ;;  %v237_v33 = vpop.f32.mrb[11].mxu0 }
 0x10b   :  { %v331_v34 = vmax.f32 %v329_v11, %v330_v22  ;;  %v421_v35 = vmax.f32 %v419_v12, %v420_v23  ;;  %v336_v36 = vmax.f32 %v334_v13, %v335_v24  ;;  %v426_v37 = vmax.f32 %v424_v14, %v425_v25 }
 0x10c   :  { %v701_v38 = vmax.f32 %v699_v16, %v700_v29  ;;  %v705_v39 = vrot.slane %v704_v30, 4  ;;  %v341_v40 = vsel %vm152_vm0, %v298_v31, -inf  ;;  %v431_v41 = vsel %vm411_vm1, %v298_v31, -inf }
 0x10d   :  { %v395_v42 = vpack.c.bf16 %v331_v34, %v331_v34  ;;  %v485_v43 = vpack.c.bf16 %v421_v35, %v421_v35  ;;  %v337_v44 = vrot.slane %v336_v36, 2  ;;  %v427_v45 = vrot.slane %v426_v37, 2 }
 0x10e   :  { %v765_v46 = vpack.c.bf16 %v701_v38, %v701_v38  ;;  %v706_v47 = vmax.f32 %v704_v30, %v705_v39  ;;  %v299_v48 = vmax.f32 %v234_v32, 0.0  ;;  %v236_v49 = vadd.f32 %v235_v26, %v1178_v27 }
 0x10f   :  { %v1207_v50 = vunpack.c.l.b16 %v485_v43  ;;  %v609_v51 = vunpack.c.l.b16 %v395_v42  ;;  %v338_v52 = vmax.f32 %v336_v36, %v337_v44  ;;  %v428_v53 = vmax.f32 %v426_v37, %v427_v45  ;;  %v241_v54 = vpop.f32.mrb[12].mxu0 }
 0x110   :  { %v789_v55 = vunpack.c.l.b16 %v765_v46  ;;  %v707_v56 = vrot.slane %v706_v47, 2  ;;  %v711_v57 = vsel %vm152_vm0, %v299_v48, -inf  ;;  %v300_v58 = vmax.f32 %v236_v49, 0.0  ;;  %v243_v59 = vpop.f32.mrb[13].mxu0 }
 0x111   :  { %v339_v60 = vrot.slane %v338_v52, 1  ;;  %v429_v61 = vrot.slane %v428_v53, 1  ;;  %v238_v62 = vadd.f32 %v237_v33, %v1180_v28  ;;  %v242_v63 = vadd.f32 %v241_v54, %v1178_v27  ;;  %v245_v0 = vpop.f32.mrb[14].mxu0 }
 0x112   :  { %v708_v1 = vmax.f32 %v706_v47, %v707_v56  ;;  %v342_v2 = vsel %vm323_vm2, %v300_v58, -inf  ;;  %v432_v3 = vsel %vm413_vm3, %v300_v58, -inf  ;;  %v244_v4 = vadd.f32 %v243_v59, %v1180_v28  ;;  %v247_v5 = vpop.f32.mrb[15].mxu0 }
 0x113   :  { %v340_v6 = vmax.f32 %v338_v52, %v339_v60  ;;  %v430_v7 = vmax.f32 %v428_v53, %v429_v61  ;;  %v343_v8 = vmax.f32 %v341_v40, %v342_v2  ;;  %v433_v9 = vmax.f32 %v431_v41, %v432_v3 }
 0x114   :  { %v709_v10 = vrot.slane %v708_v1, 1  ;;  %v301_v11 = vmax.f32 %v238_v62, 0.0  ;;  %v302_v12 = vmax.f32 %v242_v63, 0.0  ;;  %v303_v13 = vmax.f32 %v244_v4, 0.0 }
 0x115   :  { %v396_v14 = vpack.c.bf16 %v340_v6, %v340_v6  ;;  %v486_v15 = vpack.c.bf16 %v430_v7, %v430_v7  ;;  %v344_v16 = vrot.slane %v343_v8, 4  ;;  %v434_v17 = vrot.slane %v433_v9, 4 }
 0x116   :  { %v710_v19 = vmax.f32 %v708_v1, %v709_v10  ;;  %v712_v20 = vsel %vm693_vm4, %v301_v11, -inf  ;;  %v350_v21 = vsel %vm152_vm0, %v302_v12, -inf  ;;  %v440_v22 = vsel %vm411_vm1, %v302_v12, -inf }
 0x117   :  { %v1218_v23 = vunpack.c.l.b16 %v486_v15  ;;  %v610_v24 = vunpack.c.l.b16 %v396_v14  ;;  %v345_v25 = vmax.f32 %v343_v8, %v344_v16  ;;  %v435_v26 = vmax.f32 %v433_v9, %v434_v17  ;;  %v251_v29 = vpop.f32.mrb[16].mxu0 }
 0x118   :  { %v766_v30 = vpack.c.bf16 %v710_v19, %v710_v19  ;;  %v713_v31 = vmax.f32 %v711_v57, %v712_v20  ;;  %v720_v32 = vsel %vm152_vm0, %v303_v13, -inf  ;;  %v246_v33 = vadd.f32 %v245_v0, %v1178_v27  ;;  %v253_v34 = vpop.f32.mrb[17].mxu0 }
 0x119   :  { %v1223_v35 = vsel %vm517_vm5, %v610_v24, %v609_v51  ;;  %v346_v36 = vrot.slane %v345_v25, 2  ;;  %v436_v37 = vrot.slane %v435_v26, 2  ;;  %v248_v38 = vadd.f32 %v247_v5, %v1180_v28  ;;  %v255_v39 = vpop.f32.mrb[18].mxu0 }
 0x11a   :  { %v790_v40 = vunpack.c.l.b16 %v766_v30  ;;  %v714_v41 = vrot.slane %v713_v31, 4  ;;  %v304_v42 = vmax.f32 %v246_v33, 0.0  ;;  %v252_v43 = vadd.f32 %v251_v29, %v1178_v27  ;;  %v257_v44 = vpop.f32.mrb[19].mxu0 }
 0x11b   :  { %v347_v45 = vmax.f32 %v345_v25, %v346_v36  ;;  %v437_v46 = vmax.f32 %v435_v26, %v436_v37  ;;  %v305_v47 = vmax.f32 %v248_v38, 0.0  ;;  %v254_v48 = vadd.f32 %v253_v34, %v1180_v28 }
 0x11c   :  { %v1229_v49 = vsel %vm517_vm5, %v790_v40, %v789_v55  ;;  %v715_v51 = vmax.f32 %v713_v31, %v714_v41  ;;  %v351_v52 = vsel %vm323_vm2, %v304_v42, -inf  ;;  %v441_v53 = vsel %vm413_vm3, %v304_v42, -inf }
 0x11d   :  { %v348_v54 = vrot.slane %v347_v45, 1  ;;  %v438_v56 = vrot.slane %v437_v46, 1  ;;  %v352_v57 = vmax.f32 %v350_v21, %v351_v52  ;;  %v442_v58 = vmax.f32 %v440_v22, %v441_v53 }
 0x11e   :  { %v716_v59 = vrot.slane %v715_v51, 2  ;;  %v721_v60 = vsel %vm693_vm4, %v305_v47, -inf  ;;  %v306_v61 = vmax.f32 %v252_v43, 0.0  ;;  %v307_v62 = vmax.f32 %v254_v48, 0.0 }
 0x11f   :  { %v349_v63 = vmax.f32 %v347_v45, %v348_v54  ;;  %v439_v0 = vmax.f32 %v437_v46, %v438_v56  ;;  %v353_v1 = vrot.slane %v352_v57, 4  ;;  %v443_v2 = vrot.slane %v442_v58, 4  ;;  %v261_v55 = vpop.f32.mrb[20].mxu0 }
 0x120   :  { %v717_v3 = vmax.f32 %v715_v51, %v716_v59  ;;  %v722_v4 = vmax.f32 %v720_v32, %v721_v60  ;;  %v359_v5 = vsel %vm152_vm0, %v306_v61, -inf  ;;  %v449_v6 = vsel %vm411_vm1, %v306_v61, -inf  ;;  %v263_v7 = vpop.f32.mrb[21].mxu0 }
 0x121   :  { %v397_v8 = vpack.c.bf16 %v349_v63, %v349_v63  ;;  %v487_v9 = vpack.c.bf16 %v439_v0, %v439_v0  ;;  %v354_v10 = vmax.f32 %v352_v57, %v353_v1  ;;  %v444_v11 = vmax.f32 %v442_v58, %v443_v2  ;;  %v265_v12 = vpop.f32.mrb[22].mxu0 }
 0x122   :  { %v718_v13 = vrot.slane %v717_v3, 1  ;;  %v723_v14 = vrot.slane %v722_v4, 4  ;;  %v729_v15 = vsel %vm152_vm0, %v307_v62, -inf  ;;  %v256_v16 = vadd.f32 %v255_v39, %v1178_v27  ;;  %v267_v17 = vpop.f32.mrb[23].mxu0 }
 0x123   :  { %v1238_v19 = vunpack.c.l.b16 %v487_v9  ;;  %v1240_v20 = vunpack.c.l.b16 %v397_v8  ;;  %v355_v21 = vrot.slane %v354_v10, 2  ;;  %v445_v22 = vrot.slane %v444_v11, 2 }
 0x124   :  { %v719_v24 = vmax.f32 %v717_v3, %v718_v13  ;;  %v724_v25 = vmax.f32 %v722_v4, %v723_v14  ;;  %v308_v26 = vmax.f32 %v256_v16, 0.0  ;;  %v258_v29 = vadd.f32 %v257_v44, %v1180_v28 }
 0x125   :  { %v356_v30 = vmax.f32 %v354_v10, %v355_v21  ;;  %v446_v31 = vmax.f32 %v444_v11, %v445_v22  ;;  %v262_v32 = vadd.f32 %v261_v55, %v1178_v27  ;;  %v264_v33 = vadd.f32 %v263_v7, %v1180_v28 }
 0x126   :  { %v767_v34 = vpack.c.bf16 %v719_v24, %v719_v24  ;;  %v725_v36 = vrot.slane %v724_v25, 2  ;;  %v360_v37 = vsel %vm323_vm2, %v308_v26, -inf  ;;  %v450_v38 = vsel %vm413_vm3, %v308_v26, -inf }
 0x127   :  { %v357_v39 = vrot.slane %v356_v30, 1  ;;  %v447_v40 = vrot.slane %v446_v31, 1  ;;  %v361_v41 = vmax.f32 %v359_v5, %v360_v37  ;;  %v451_v42 = vmax.f32 %v449_v6, %v450_v38  ;;  %v271_v43 = vpop.f32.mrb[24].mxu0 }
 0x128   :  { %v1247_v45 = vunpack.c.l.b16 %v767_v34  ;;  %v726_v44 = vmax.f32 %v724_v25, %v725_v36  ;;  %v309_v46 = vmax.f32 %v258_v29, 0.0  ;;  %v310_v47 = vmax.f32 %v262_v32, 0.0  ;;  %v273_v48 = vpop.f32.mrb[25].mxu0 }
 0x129   :  { %v358_v51 = vmax.f32 %v356_v30, %v357_v39  ;;  %v448_v52 = vmax.f32 %v446_v31, %v447_v40  ;;  %v362_v53 = vrot.slane %v361_v41, 4  ;;  %v452_v54 = vrot.slane %v451_v42, 4  ;;  %v275_v56 = vpop.f32.mrb[26].mxu0 }
 0x12a   :  { %v727_v57 = vrot.slane %v726_v44, 1  ;;  %v730_v58 = vsel %vm693_vm4, %v309_v46, -inf  ;;  %v368_v59 = vsel %vm152_vm0, %v310_v47, -inf  ;;  %v458_v60 = vsel %vm411_vm1, %v310_v47, -inf  ;;  %v1252_v61 = vpop.f32.mrb[27].mxu0 }
 0x12b   :  { %v398_v62 = vpack.c.bf16 %v358_v51, %v358_v51  ;;  %v488_v63 = vpack.c.bf16 %v448_v52, %v448_v52  ;;  %v363_v0 = vmax.f32 %v361_v41, %v362_v53  ;;  %v453_v1 = vmax.f32 %v451_v42, %v452_v54 }
 0x12c   :  { %v728_v2 = vmax.f32 %v726_v44, %v727_v57  ;;  %v731_v55 = vmax.f32 %v729_v15, %v730_v58  ;;  %v311_v3 = vmax.f32 %v264_v33, 0.0  ;;  %v266_v4 = vadd.f32 %v265_v12, %v1178_v27 }
 0x12d   :  { %v1255_v5 = vunpack.c.l.b16 %v488_v63  ;;  %v1257_v6 = vunpack.c.l.b16 %v398_v62  ;;  %v364_v7 = vrot.slane %v363_v0, 2  ;;  %v454_v8 = vrot.slane %v453_v1, 2 }
 0x12e   :  { %v768_v9 = vpack.c.bf16 %v728_v2, %v728_v2  ;;  %v732_v10 = vrot.slane %v731_v55, 4  ;;  %v738_v11 = vsel %vm152_vm0, %v311_v3, -inf  ;;  %v312_v13 = vmax.f32 %v266_v4, 0.0 }
 0x12f   :  { %v365_v14 = vmax.f32 %v363_v0, %v364_v7  ;;  %v455_v16 = vmax.f32 %v453_v1, %v454_v8  ;;  %v268_v21 = vadd.f32 %v267_v17, %v1180_v28  ;;  %v272_v15 = vadd.f32 %v271_v43, %v1178_v27  ;;  %v281_v22 = vpop.f32.mrb[28].mxu0 }
 0x130   :  { %v1262_v24 = vunpack.c.l.b16 %v768_v9  ;;  %v733_v12 = vmax.f32 %v731_v55, %v732_v10  ;;  %v369_v25 = vsel %vm323_vm2, %v312_v13, -inf  ;;  %v459_v26 = vsel %vm413_vm3, %v312_v13, -inf  ;;  %v1266_v29 = vpop.f32.mrb[29].mxu0 }
 0x131   :  { %v366_v30 = vrot.slane %v365_v14, 1  ;;  %v456_v31 = vrot.slane %v455_v16, 1  ;;  %v370_v32 = vmax.f32 %v368_v59, %v369_v25  ;;  %v460_v33 = vmax.f32 %v458_v60, %v459_v26  ;;  %v1268_v34 = vpop.f32.mrb[30].mxu0 }
 0x132   :  { %v734_v36 = vrot.slane %v733_v12, 2  ;;  %v313_v17 = vmax.f32 %v268_v21, 0.0  ;;  %v314_v37 = vmax.f32 %v272_v15, 0.0  ;;  %v274_v38 = vadd.f32 %v273_v48, %v1180_v28  ;;  %v287_v39 = vpop.f32.mrb[31].mxu0 }
 0x133   :  { %v367_v40 = vmax.f32 %v365_v14, %v366_v30  ;;  %v457_v41 = vmax.f32 %v455_v16, %v456_v31  ;;  %v371_v42 = vrot.slane %v370_v32, 4  ;;  %v461_v43 = vrot.slane %v460_v33, 4 }
 0x134   :  { %v735_v44 = vmax.f32 %v733_v12, %v734_v36  ;;  %v739_v46 = vsel %vm693_vm4, %v313_v17, -inf  ;;  %v377_v47 = vsel %vm152_vm0, %v314_v37, -inf  ;;  %v467_v51 = vsel %vm411_vm1, %v314_v37, -inf }
 0x135   :  { %v399_v52 = vpack.c.bf16 %v367_v40, %v367_v40  ;;  %v489_v53 = vpack.c.bf16 %v457_v41, %v457_v41  ;;  %v372_v54 = vmax.f32 %v370_v32, %v371_v42  ;;  %v462_v57 = vmax.f32 %v460_v33, %v461_v43 }
 0x136   :  { %v736_v58 = vrot.slane %v735_v44, 1  ;;  %v740_v59 = vmax.f32 %v738_v11, %v739_v46  ;;  %v315_v60 = vmax.f32 %v274_v38, 0.0  ;;  %v276_v48 = vadd.f32 %v275_v56, %v1178_v27 }
 0x137   :  { %v1275_v62 = vunpack.c.l.b16 %v489_v53  ;;  %v1277_v63 = vunpack.c.l.b16 %v399_v52  ;;  %v373_v0 = vrot.slane %v372_v54, 2  ;;  %v463_v1 = vrot.slane %v462_v57, 2 }
 0x138   :  { %v737_v2 = vmax.f32 %v735_v44, %v736_v58  ;;  %v741_v55 = vrot.slane %v740_v59, 4  ;;  %v747_v3 = vsel %vm152_vm0, %v315_v60, -inf  ;;  %v316_v4 = vmax.f32 %v276_v48, 0.0 }
 0x139   :  { %v374_v7 = vmax.f32 %v372_v54, %v373_v0  ;;  %v464_v8 = vmax.f32 %v462_v57, %v463_v1  ;;  %v278_v9 = vadd.f32 %v1252_v61, %v1180_v28  ;;  %v282_v10 = vadd.f32 %v281_v22, %v1178_v27 }
 0x13a   :  { %v769_v11 = vpack.c.bf16 %v737_v2, %v737_v2  ;;  %v742_v56 = vmax.f32 %v740_v59, %v741_v55  ;;  %v378_v13 = vsel %vm323_vm2, %v316_v4, -inf  ;;  %v468_v14 = vsel %vm413_vm3, %v316_v4, -inf }
 0x13b   :  { %v375_v16 = vrot.slane %v374_v7, 1  ;;  %v465_v21 = vrot.slane %v464_v8, 1  ;;  %v379_v15 = vmax.f32 %v377_v47, %v378_v13  ;;  %v469_v12 = vmax.f32 %v467_v51, %v468_v14 }
 0x13c   :  { %v1285_v25 = vunpack.c.l.b16 %v769_v11  ;;  %v743_v26 = vrot.slane %v742_v56, 2  ;;  %v317_v30 = vmax.f32 %v278_v9, 0.0  ;;  %v318_v31 = vmax.f32 %v282_v10, 0.0 }
 0x13d   :  { %v376_v32 = vmax.f32 %v374_v7, %v375_v16  ;;  %v466_v33 = vmax.f32 %v464_v8, %v465_v21  ;;  %v380_v61 = vrot.slane %v379_v15, 4  ;;  %v470_v36 = vrot.slane %v469_v12, 4 }
 0x13e   :  { %v744_v22 = vmax.f32 %v742_v56, %v743_v26  ;;  %v748_v17 = vsel %vm693_vm4, %v317_v30, -inf  ;;  %v386_v37 = vsel %vm152_vm0, %v318_v31, -inf  ;;  %v476_v38 = vsel %vm411_vm1, %v318_v31, -inf }
 0x13f   :  { %v400_v40 = vpack.c.bf16 %v376_v32, %v376_v32  ;;  %v490_v41 = vpack.c.bf16 %v466_v33, %v466_v33  ;;  %v381_v42 = vmax.f32 %v379_v15, %v380_v61  ;;  %v471_v43 = vmax.f32 %v469_v12, %v470_v36 }
 0x140   :  { %v745_v44 = vrot.slane %v744_v22, 1  ;;  %v749_v46 = vmax.f32 %v747_v3, %v748_v17  ;;  %v284_v47 = vadd.f32 %v1266_v29, %v1180_v28  ;;  %v286_v51 = vadd.f32 %v1268_v34, %v1178_v27 }
 0x141   :  { %v614_v52 = vunpack.c.l.b16 %v400_v40  ;;  %v382_v53 = vrot.slane %v381_v42, 2  ;;  %v472_v54 = vrot.slane %v471_v43, 2  ;;  %v288_v57 = vadd.f32 %v287_v39, %v1180_v28 }
 0x142   :  { %v746_v58 = vmax.f32 %v744_v22, %v745_v44  ;;  %v750_v59 = vrot.slane %v749_v46, 4  ;;  %v319_v60 = vmax.f32 %v284_v47, 0.0  ;;  %v320_v48 = vmax.f32 %v286_v51, 0.0 }
 0x143   :  { %v383_v0 = vmax.f32 %v381_v42, %v382_v53  ;;  %v473_v1 = vmax.f32 %v471_v43, %v472_v54  ;;  %v321_v2 = vmax.f32 %v288_v57, 0.0  ;;  %v514_v55 = vunpack.c.l.b16 %v490_v41 }
 0x144   :  { %v770_v29 = vpack.c.bf16 %v746_v58, %v746_v58  ;;  %v751_v3 = vmax.f32 %v749_v46, %v750_v59  ;;  %v756_v27 = vsel %vm152_vm0, %v319_v60, -inf  ;;  %v387_v34 = vsel %vm323_vm2, %v320_v48, -inf }
 0x145   :  { %v384_v4 = vrot.slane %v383_v0, 1  ;;  %v474_v7 = vrot.slane %v473_v1, 1  ;;  %v388_v28 = vmax.f32 %v386_v37, %v387_v34  ;;  %v477_v39 = vsel %vm413_vm3, %v320_v48, -inf }
 0x146   :  { %v794_v8 = vunpack.c.l.b16 %v770_v29  ;;  %v752_v9 = vrot.slane %v751_v3, 2  ;;  %v478_v10 = vmax.f32 %v476_v38, %v477_v39  ;;  %v757_v11 = vsel %vm693_vm4, %v321_v2, -inf  ;;  %v1021_v39 = vld [vmem:[%s1386_s3 + $0x8] sm:$0xff]  }
 0x147   :  { %v385_v56 = vmax.f32 %v383_v0, %v384_v4  ;;  %v389_v13 = vrot.slane %v388_v28, 4  ;;  %v758_v14 = vmax.f32 %v756_v27, %v757_v11  ;;  %v475_v16 = vmax.f32 %v473_v1, %v474_v7  ;;  %v1020_v7 = vld [vmem:[%s1386_s3] sm:$0xff]  }
 0x148   :  { %v753_v21 = vmax.f32 %v751_v3, %v752_v9  ;;  %v479_v15 = vrot.slane %v478_v10, 4  ;;  %v518_v12 = vsel %vm517_vm5, %v1218_v23, %v1207_v50  ;;  %v618_v26 = vsel %vm519_vm6, %v1240_v20, %v1223_v35  ;;  %v1023_v9 = vld [vmem:[%s1386_s3 + $0x18] sm:$0xff]  }
 0x149   :  { %v401_v30 = vpack.c.bf16 %v385_v56, %v385_v56  ;;  %v390_v31 = vmax.f32 %v388_v28, %v389_v13  ;;  %v759_v32 = vrot.slane %v758_v14, 4  ;;  %v491_v33 = vpack.c.bf16 %v475_v16, %v475_v16  ;;  %v1025_v56 = vld [vmem:[%s1386_s3 + $0x48] sm:$0xff]   ;;  %v1026_v13 = vld [vmem:[%s1386_s3 + $0x50] sm:$0xff]  }
 0x14a   :  { %v754_v61 = vrot.slane %v753_v21, 1  ;;  %v480_v36 = vmax.f32 %v478_v10, %v479_v15  ;;  %v520_v22 = vsel %vm519_vm6, %v1238_v19, %v518_v12  ;;  %v619_v17 = vsel %vm521_vm7, %v1257_v6, %v618_v26  ;;  %v1024_v10 = vld [vmem:[%s1386_s3 + $0x40] sm:$0xff]  }
 0x14b   :  { %v615_v37 = vunpack.c.l.b16 %v401_v30  ;;  %v391_v38 = vrot.slane %v390_v31, 2  ;;  %v760_v40 = vmax.f32 %v758_v14, %v759_v32  ;;  %v515_v50 = vunpack.c.l.b16 %v491_v33  ;;  %v1027_v14 = vld [vmem:[%s1386_s3 + $0x58] sm:$0xff]  }
 0x14c   :  { %v755_v23 = vmax.f32 %v753_v21, %v754_v61  ;;  %v481_v41 = vrot.slane %v480_v36, 2  ;;  %v522_v35 = vsel %vm521_vm7, %v1255_v5, %v520_v22  ;;  %v620_v20 = vsel %vm523_vm8, %v1277_v63, %v619_v17  ;;  %v936_v22 = vld [vmem:[%s1387_s4] ss:$0 sm:$0xff] }
 0x14d   :  { %v392_v42 = vmax.f32 %v390_v31, %v391_v38  ;;  %v761_v43 = vrot.slane %v760_v40, 2  ;;  %v524_v19 = vsel %vm523_vm8, %v1275_v62, %v522_v35  ;;  %v621_v44 = vsel %vm525_vm9, %v614_v52, %v620_v20 }
 0x14e   :  { %v771_v6 = vpack.c.bf16 %v755_v23, %v755_v23  ;;  %v482_v46 = vmax.f32 %v480_v36, %v481_v41  ;;  %v526_v47 = vsel %vm525_vm9, %v514_v55, %v524_v19  ;;  %v622_v51 = vsel %vm527_vm10, %v615_v37, %v621_v44 }
 0x14f   :  { %v393_v53 = vrot.slane %v392_v42, 1  ;;  %v762_v54 = vmax.f32 %v760_v40, %v761_v43  ;;  %v528_v5 = vsel %vm527_vm10, %v515_v50, %v526_v47  ;;  %v798_v63 = vsel %vm519_vm6, %v1247_v45, %v1229_v49 }
 0x150   :  { %v795_v57 = vunpack.c.l.b16 %v771_v6  ;;  %v483_v58 = vrot.slane %v482_v46, 1  ;;  %v799_v62 = vsel %vm521_vm7, %v1262_v24, %v798_v63 }
 0x151   :  { %v394_v52 = vmax.f32 %v392_v42, %v393_v53  ;;  %v763_v59 = vrot.slane %v762_v54, 1  ;;  %v800_v60 = vsel %vm523_vm8, %v1285_v25, %v799_v62 }
 0x152   :  { %v484_v48 = vmax.f32 %v482_v46, %v483_v58  ;;  %v801_v0 = vsel %vm525_vm9, %v794_v8, %v800_v60  ;;  %v1022_v8 = vld [vmem:[%s1386_s3 + $0x10] sm:$0xff]   ;;  %s1083_s3 = smov [#allocation5]  }
 0x153   :  { %v402_v1 = vpack.c.bf16 %v394_v52, %v394_v52  ;;  %v764_v2 = vmax.f32 %v762_v54, %v763_v59  ;;  %v802_v49 = vsel %vm527_vm10, %v795_v57, %v801_v0  ;;  %s888_s23 = sshll.u32 %s1083_s3, 4  ;;  %s889_s23 = int_to_ptr.vmem [resolvable:$true] %s888_s23 }
 0x154   :  { %v492_v45 = vpack.c.bf16 %v484_v48, %v484_v48  ;;  %s1050_s24 = scalar_lea.vmem %s889_s23, 128  ;;  %p1055_p9 = scmp.lt.s32.totalorder %s889_s23, %s889_s23 }
 0x155   :  { %v772_v55 = vpack.c.bf16 %v764_v2, %v764_v2  ;;  %v616_v24 = vunpack.c.l.b16 %v402_v1  ;;  %p1051_p8 = scmp.ne.s32.totalorder %s889_s23, %s1050_s24  ;;  %p1056_p10 = scmp.lt.s32.totalorder %s1050_s24, %s1050_s24 }
 0x156   :  { %v516_v29 = vunpack.c.l.b16 %v492_v45 }
 0x157   :  { %v623_v3 = vsel %vm529_vm12, %v616_v24, %v622_v51  ;;  %v796_v27 = vunpack.c.l.b16 %v772_v55  ;;  %p1057_p11 = por %p1056_p10, %p1055_p9 }
 0x158   :  { %v530_v34 = vsel %vm529_vm12, %v516_v29, %v528_v5  ;;  %v624_v11 = vpack.c.b16 %v623_v3, %v623_v3 }
 0x159   :  { %v531_v25 = vpack.c.b16 %v530_v34, %v530_v34  ;;  %v803_v4 = vsel %vm529_vm12, %v796_v27, %v802_v49  ;;  %p1058_p12 = pnand %p1057_p11, %p1051_p8 }
 0x15a   :  { %v804_v16 = vpack.c.b16 %v803_v4, %v803_v4 }
 0x15b   :  { %532 = vrot.lane.b32.xlu0 %v531_v25, %s1082_s2 }
 0x1cd   :  { %v533_v28 = vpop.permute.xlu0 %532 }
 0x1ce   :  { %961 = vmatmul.mubr.msk.bf16.vlgmr.msra.gmra.mrb[0].mxu1 %vm152_vm0, %v533_v28 }
 0x1cf   :  { %965 = vmatpush3.bf16.msra.mxu1 %v1020_v7  ;;  %972 = vmatprep.mubr.msk.bf16.mxu1 %vm1081_vm11, %v1080_v18 }
 0x1d0   :  { %966 = vmatprep.subr.bf16.mxu1 %v1080_v18 }
 0x1d3   :  { %967 = vmatpush3.bf16.msra.mxu1 %v1021_v39 }
 0x1d4   :  { %968 = vmatprep.subr.bf16.mxu1 %v1080_v18 }
 0x1d7   :  { %969 = vmatpush3.bf16.msra.mxu1 %v1022_v8 }
 0x1d8   :  { %970 = vmatprep.subr.bf16.mxu1 %v1080_v18 }
 0x1db   :  { %971 = vmatpush3.bf16.msra.mxu1 %v1023_v9 }
 0x1dc   :  { %976 = vmatprep.subr.bf16.mxu1 %v1080_v18 }
 0x1de   :  { %973 = vmatmul.mubr.msk.bf16.vlgmr.msra.gmra.mrb[4].mxu1 %vm152_vm0, %v624_v11 }
 0x1df   :  { %977 = vmatpush3.bf16.msra.mxu1 %v1024_v10  ;;  %984 = vmatprep.mubr.msk.bf16.mxu1 %vm1081_vm11, %v1080_v18 }
 0x1e0   :  { %978 = vmatprep.subr.bf16.mxu1 %v1080_v18 }
 0x1e3   :  { %979 = vmatpush3.bf16.msra.mxu1 %v1025_v56 }
 0x1e4   :  { %980 = vmatprep.subr.bf16.mxu1 %v1080_v18 }
 0x1e7   :  { %981 = vmatpush3.bf16.msra.mxu1 %v1026_v13 }
 0x1e8   :  { %982 = vmatprep.subr.bf16.mxu1 %v1080_v18 }
 0x1eb   :  { %983 = vmatpush3.bf16.msra.mxu1 %v1027_v14 }
 0x1ee   :  { %985 = vmatmul.mubr.msk.bf16.vlgmr.msra.gmra.mrb[8].mxu1 %vm152_vm0, %v804_v16 }
 0x2a1   :  { %v595_v21 = vpop.f32.mrb[0].mxu1 }
 0x2a2   :  { %v962_v15 = vpop.f32.mrb[1].mxu1 }
 0x2a3   :  { %v598_v12 = vpop.f32.mrb[2].mxu1 }
 0x2a4   :  { %v963_v26 = vpop.f32.mrb[3].mxu1 }
 0x2b1   :  { %v686_v30 = vpop.f32.mrb[4].mxu1 }
 0x2b2   :  { %v687_v31 = vadd.f32 %v686_v30, %v595_v21  ;;  %v974_v32 = vpop.f32.mrb[5].mxu1 }
 0x2b3   :  { %v689_v33 = vpop.f32.mrb[6].mxu1 }
 0x2b4   :  { %v975_v61 = vpop.f32.mrb[7].mxu1 }
 0x2c1   :  { %v866_v36 = vpop.f32.mrb[8].mxu1 }
 0x2c2   :  { %v872_v18 = vadd.f32 %v866_v36, %v687_v31  ;;  %v986_v17 = vpop.f32.mrb[9].mxu1 }
 0x2c3   :  { %v869_v37 = vpop.f32.mrb[10].mxu1 }
 0x2c4   :  { %v880_v38 = vadd.f32 %v936_v22, %v872_v18  ;;  %v987_v40 = vpop.f32.mrb[11].mxu1 }
 0x2c6   :  { %881 = vst [vmem:[#allocation5] sm:$0xff] %v880_v38 }
 0x2c7   :  { %1061 = shalt.err (!%p1058_p12)
}
 0x2c8   :  { %s1062_s4 = scalar_lea.hbm %s1388_s5, 128 }
 0x2c9   :  { %p1063_p13 = scmp.ne.s32.totalorder %s1388_s5, %s1062_s4  ;;  %p1066_p0 = scmp.lt.u32.totalorder %s1062_s4, %s1388_s5 }
 0x2cb   :  { %p1068_p1 = pnand %p1066_p0, %p1063_p13 }
 0x2cd   :  { %1071 = shalt.err (!%p1068_p1)
}
 0x2ce   :  { %891 = dma.vmem_to_hbm [thread:$0]  %s889_s23, 128, %s1388_s5, [#allocation4]  }
 0x2cf   :  { %1074 = dma.done.wait [#allocation4], 128  }
 0x2d0   :  { %1075 = vsyncadd [#allocation4], 4294967168 }
 0x2d1   :  { %895 = vsyncpa [#allocation3], 1 }
 0x2d2   :  { %896 = vsyncpa [#allocation4], 1 }

</bundles_post_ra>
